<compile_context>
chip_gen: v7x
topology: tpu7x:2x2x1
jax: 0.10.0
libtpu: 0.0.40
codegen_flags: <defaults>
</compile_context>

<pallas_src>
import functools
import math

import jax
import jax.numpy as jnp
from jax.experimental import pallas as pl
from jax.experimental.pallas import tpu as pltpu


def lstm_kernel(x_ref, wx_ref, wh_ref, b_ref, wp_ref, bp_ref, out_ref,
                *, T, B, H):
    """Entire LSTM forward (all T steps + readout) in one invocation.

    x_ref : (T*B, D)  time-major, flattened over (time, batch)
    wx_ref: (D, 4H)   fused input->gate weights  [g,i,f,o]; i/f/o pre-scaled 0.5
    wh_ref: (H, 4H)   fused hidden->gate weights [g,i,f,o]; i/f/o pre-scaled 0.5
    b_ref : (1, 4H)   fused gate biases;                    i/f/o pre-scaled 0.5
    wp_ref: (H, Cp)   readout weights, lane-padded to Cp (multiple of 128)
    bp_ref: (1, Cp)   readout bias, lane-padded
    out_ref: (B, Cp)
    """
    wh = wh_ref[...]

    # Input projection for ALL time steps in a single MXU call, bias folded in.
    # (T*B, D) @ (D, 4H) -> (T*B, 4H)
    xz = (jnp.dot(x_ref[...], wx_ref[...], preferred_element_type=jnp.float32)
          + b_ref[...])

    # sigmoid(u) = 0.5*tanh(u/2) + 0.5.  The wrapper pre-scaled the i/f/o
    # columns by 0.5, so ONE full-width tanh per step plus this hoisted
    # per-lane affine recovers all four gate activations.
    lane = jax.lax.broadcasted_iota(jnp.int32, (B, 4 * H), dimension=1)
    is_g = lane < H
    gate_scale = jnp.where(is_g, 1.0, 0.5).astype(jnp.float32)   # (B, 4H)
    gate_shift = jnp.where(is_g, 0.0, 0.5).astype(jnp.float32)   # (B, 4H)

    h = jnp.zeros((B, H), jnp.float32)
    c = jnp.zeros((B, H), jnp.float32)

    # T is small and static: fully unrolled recurrence, h/c stay in vregs.
    # TODO(synk): for large T, spill xz to a VMEM scratch and use lax.fori_loop.
    for t in range(T):
        z = xz[t * B:(t + 1) * B, :]                              # (B, 4H)
        if t > 0:  # h == 0 at t == 0, skip the zero matmul
            z = z + jnp.dot(h, wh, preferred_element_type=jnp.float32)
        a = jnp.tanh(z) * gate_scale + gate_shift   # [tanh(g)|sig(i)|sig(f)|sig(o)]
        g = a[:, 0 * H:1 * H]
        i = a[:, 1 * H:2 * H]
        f = a[:, 2 * H:3 * H]
        o = a[:, 3 * H:4 * H]
        c = g * i + c * f
        h = jnp.tanh(c) * o

    # Lane-dense readout: p = h_T @ Wp + bp, written to the padded output block.
    out_ref[...] = (jnp.dot(h, wp_ref[...], preferred_element_type=jnp.float32)
                    + bp_ref[...])


def fuse_params(params):
    """One-time parameter fusion — call at init, NOT per forward call.

    Gate order [g, i, f, o]; the i/f/o columns and biases are pre-scaled by 0.5
    so the kernel can compute sigmoid as 0.5*tanh(scaled) + 0.5 with a single
    full-vreg tanh per step.  The readout is zero-padded to 128 output lanes.
    """
    H = params["wgh"].shape[0]
    C = params["wph"].shape[1]

    wx = jnp.concatenate(
        [params["wgx"], 0.5 * params["wix"], 0.5 * params["wfx"],
         0.5 * params["wox"]], axis=1).astype(jnp.float32)               # (D, 4H)
    wh = jnp.concatenate(
        [params["wgh"], 0.5 * params["wih"], 0.5 * params["wfh"],
         0.5 * params["woh"]], axis=1).astype(jnp.float32)               # (H, 4H)
    b = jnp.concatenate(
        [params["bg"], 0.5 * params["bi"], 0.5 * params["bf"],
         0.5 * params["bo"]]).reshape(1, 4 * H).astype(jnp.float32)      # (1, 4H)

    C_pad = pl.cdiv(C, 128) * 128
    wp = jnp.zeros((H, C_pad), jnp.float32).at[:, :C].set(params["wph"])
    bp = jnp.zeros((1, C_pad), jnp.float32).at[:, :C].set(params["bp"])
    return {"wx": wx, "wh": wh, "b": b, "wp": wp, "bp": bp}


@functools.partial(jax.jit, static_argnames=("num_classes",))
def lstm_forward(x, fused, *, num_classes):
    """x: (batch, seq, input_dim) float32.  Returns (batch, num_classes)."""
    B, T, D = x.shape
    H = fused["wh"].shape[0]
    C_pad = fused["wp"].shape[1]

    # Keep batch a multiple of 8 so every per-step xz slice is sublane-aligned.
    B_pad = max(8, pl.cdiv(B, 8) * 8)
    if B_pad != B:
        x = jnp.pad(x, ((0, B_pad - B), (0, 0), (0, 0)))

    # Time-major, flattened over (T, B): row t*B_pad + b holds x[b, t].
    # (Fuses with the rest of the jitted graph — no standalone per-call HLOs.)
    x_flat = jnp.transpose(x, (1, 0, 2)).reshape(T * B_pad, D).astype(jnp.float32)

    kernel = functools.partial(lstm_kernel, T=T, B=B_pad, H=H)
    vmem = pl.BlockSpec(memory_space=pltpu.MemorySpace.VMEM)   # whole array in VMEM

    cost = pl.CostEstimate(
        flops=2 * (T * B_pad * D * 4 * H
                   + (T - 1) * B_pad * H * 4 * H
                   + B_pad * H * C_pad),
        transcendentals=T * B_pad * 5 * H,
        bytes_accessed=4 * (T * B_pad * D + D * 4 * H + H * 4 * H + 4 * H
                            + H * C_pad + C_pad + B_pad * C_pad),
    )

    out_pad = pl.pallas_call(
        kernel,
        out_shape=jax.ShapeDtypeStruct((B_pad, C_pad), jnp.float32),
        in_specs=[vmem] * 6,
        out_specs=vmem,
        cost_estimate=cost,
    )(x_flat, fused["wx"], fused["wh"], fused["b"], fused["wp"], fused["bp"])

    return out_pad[:B, :num_classes]


def lstm_reference(x, params):
    """Pure-JAX reference mirroring the PyTorch forward()."""
    B, T, D = x.shape
    H = params["wgh"].shape[0]
    h_prev = jnp.zeros((B, H), jnp.float32)
    c_prev = jnp.zeros((B, H), jnp.float32)
    for t in range(T):
        xt = x[:, t]
        gt = jnp.tanh(xt @ params["wgx"] + h_prev @ params["wgh"] + params["bg"])
        it = jax.nn.sigmoid(xt @ params["wix"] + h_prev @ params["wih"] + params["bi"])
        ft = jax.nn.sigmoid(xt @ params["wfx"] + h_prev @ params["wfh"] + params["bf"])
        ot = jax.nn.sigmoid(xt @ params["wox"] + h_prev @ params["woh"] + params["bo"])
        ct = gt * it + c_prev * ft
        ht = jnp.tanh(ct) * ot
        c_prev, h_prev = ct, ht
    return h_prev @ params["wph"] + params["bp"]


def init_params(key, input_dim, num_hidden, num_classes):
    """Deterministic kaiming_uniform-style init (fan_in = dim 1, gain=sqrt(2))."""
    def kaiming(k, shape):
        fan_in = shape[1]
        bound = math.sqrt(2.0) * math.sqrt(3.0 / fan_in)
        return jax.random.uniform(k, shape, jnp.float32, -bound, bound)

    keys = jax.random.split(key, 9)
    return {
        "wgh": kaiming(keys[0], (num_hidden, num_hidden)),
        "wgx": kaiming(keys[1], (input_dim, num_hidden)),
        "bg": jnp.zeros((num_hidden,), jnp.float32),
        "wih": kaiming(keys[2], (num_hidden, num_hidden)),
        "wix": kaiming(keys[3], (input_dim, num_hidden)),
        "bi": jnp.zeros((num_hidden,), jnp.float32),
        "wfh": kaiming(keys[4], (num_hidden, num_hidden)),
        "wfx": kaiming(keys[5], (input_dim, num_hidden)),
        "bf": jnp.ones((num_hidden,), jnp.float32),   # forget bias = 1, as in module
        "woh": kaiming(keys[6], (num_hidden, num_hidden)),
        "wox": kaiming(keys[7], (input_dim, num_hidden)),
        "bo": jnp.zeros((num_hidden,), jnp.float32),
        "wph": kaiming(keys[8], (num_hidden, num_classes)),
        "bp": jnp.zeros((num_classes,), jnp.float32),
    }


if __name__ == "__main__":
    BATCH, SEQ, INPUT_DIM, HIDDEN, CLASSES = 8, 8, 16, 32, 10

    key = jax.random.PRNGKey(0)
    k_x, k_p = jax.random.split(key)
    x = jax.random.normal(k_x, (BATCH, SEQ, INPUT_DIM), jnp.float32)
    params = init_params(k_p, INPUT_DIM, HIDDEN, CLASSES)

    # One-time weight fusion (hoisted out of the per-call path).
    fused = jax.tree_util.tree_map(jax.block_until_ready, fuse_params(params))

    out = jax.block_until_ready(lstm_forward(x, fused, num_classes=CLASSES))
    ref = jax.block_until_ready(lstm_reference(x, params))

    assert out.shape == (BATCH, CLASSES), out.shape
    max_err = float(jnp.max(jnp.abs(out - ref)))
    assert max_err < 1e-4, f"max abs err = {max_err}"

    print("KERNEL_OK")
</pallas_src>

<mosaic_0001>
module attributes {stable_mosaic.version = 11 : i64} {
  func.func @lstm_kernel(%arg0: memref<64x16xf32, #tpu.memory_space<vmem>>, %arg1: memref<16x128xf32, #tpu.memory_space<vmem>>, %arg2: memref<32x128xf32, #tpu.memory_space<vmem>>, %arg3: memref<1x128xf32, #tpu.memory_space<vmem>>, %arg4: memref<32x128xf32, #tpu.memory_space<vmem>>, %arg5: memref<1x128xf32, #tpu.memory_space<vmem>>, %arg6: memref<8x128xf32, #tpu.memory_space<vmem>>) attributes {dimension_semantics = [], scalar_prefetch = 0 : i64, scratch_operands = 0 : i64, tpu.core_type = #tpu.core_type<tc>} {
    %c0 = arith.constant 0 : index
    %c0_0 = arith.constant 0 : index
    %0 = vector.load %arg2[%c0, %c0_0] : memref<32x128xf32, #tpu.memory_space<vmem>>, vector<32x128xf32>
    %c0_1 = arith.constant 0 : index
    %c0_2 = arith.constant 0 : index
    %1 = vector.load %arg0[%c0_1, %c0_2] : memref<64x16xf32, #tpu.memory_space<vmem>>, vector<64x16xf32>
    %c0_3 = arith.constant 0 : index
    %c0_4 = arith.constant 0 : index
    %2 = vector.load %arg1[%c0_3, %c0_4] : memref<16x128xf32, #tpu.memory_space<vmem>>, vector<16x128xf32>
    %cst = arith.constant dense<0.000000e+00> : vector<64x128xf32>
    %3 = tpu.matmul %1, %2, %cst {dimension_numbers = #tpu.dot_dimension_numbers<[1], [0], [0], [1], [0, 0, 1, 1], [], []>} : vector<64x16xf32>, vector<16x128xf32>, vector<64x128xf32> -> vector<64x128xf32>
    %c0_5 = arith.constant 0 : index
    %c0_6 = arith.constant 0 : index
    %4 = vector.load %arg3[%c0_5, %c0_6] : memref<1x128xf32, #tpu.memory_space<vmem>>, vector<1x128xf32>
    %5 = vector.broadcast %4 : vector<1x128xf32> to vector<64x128xf32>
    %6 = arith.addf %3, %5 : vector<64x128xf32>
    %7 = tpu.iota {dimensions = array<i32: 1>} : vector<8x128xi32>
    %c32_i32 = arith.constant 32 : i32
    %8 = vector.broadcast %c32_i32 : i32 to vector<8x128xi32>
    %9 = arith.cmpi slt, %7, %8 : vector<8x128xi32>
    %cst_7 = arith.constant 1.000000e+00 : f32
    %cst_8 = arith.constant 5.000000e-01 : f32
    %10 = vector.broadcast %cst_7 : f32 to vector<8x128xf32>
    %11 = vector.broadcast %cst_8 : f32 to vector<8x128xf32>
    %12 = arith.select %9, %10, %11 : vector<8x128xi1>, vector<8x128xf32>
    %cst_9 = arith.constant 0.000000e+00 : f32
    %cst_10 = arith.constant 5.000000e-01 : f32
    %13 = vector.broadcast %cst_9 : f32 to vector<8x128xf32>
    %14 = vector.broadcast %cst_10 : f32 to vector<8x128xf32>
    %15 = arith.select %9, %13, %14 : vector<8x128xi1>, vector<8x128xf32>
    %cst_11 = arith.constant 0.000000e+00 : f32
    %16 = vector.broadcast %cst_11 : f32 to vector<8x32xf32>
    %17 = vector.extract_strided_slice %6 {offsets = [0, 0], sizes = [8, 128], strides = [1, 1]} : vector<64x128xf32> to vector<8x128xf32>
    %18 = math.tanh %17 : vector<8x128xf32>
    %19 = arith.mulf %18, %12 : vector<8x128xf32>
    %20 = arith.addf %19, %15 : vector<8x128xf32>
    %21 = vector.extract_strided_slice %20 {offsets = [0, 0], sizes = [8, 32], strides = [1, 1]} : vector<8x128xf32> to vector<8x32xf32>
    %22 = vector.extract_strided_slice %20 {offsets = [0, 32], sizes = [8, 32], strides = [1, 1]} : vector<8x128xf32> to vector<8x32xf32>
    %23 = vector.extract_strided_slice %20 {offsets = [0, 64], sizes = [8, 32], strides = [1, 1]} : vector<8x128xf32> to vector<8x32xf32>
    %24 = vector.extract_strided_slice %20 {offsets = [0, 96], sizes = [8, 32], strides = [1, 1]} : vector<8x128xf32> to vector<8x32xf32>
    %25 = arith.mulf %21, %22 : vector<8x32xf32>
    %26 = arith.mulf %16, %23 : vector<8x32xf32>
    %27 = arith.addf %25, %26 : vector<8x32xf32>
    %28 = math.tanh %27 : vector<8x32xf32>
    %29 = arith.mulf %28, %24 : vector<8x32xf32>
    %30 = vector.extract_strided_slice %6 {offsets = [8, 0], sizes = [8, 128], strides = [1, 1]} : vector<64x128xf32> to vector<8x128xf32>
    %cst_12 = arith.constant dense<0.000000e+00> : vector<8x128xf32>
    %31 = tpu.matmul %29, %0, %cst_12 {dimension_numbers = #tpu.dot_dimension_numbers<[1], [0], [0], [1], [0, 0, 1, 1], [], []>} : vector<8x32xf32>, vector<32x128xf32>, vector<8x128xf32> -> vector<8x128xf32>
    %32 = arith.addf %30, %31 : vector<8x128xf32>
    %33 = math.tanh %32 : vector<8x128xf32>
    %34 = arith.mulf %33, %12 : vector<8x128xf32>
    %35 = arith.addf %34, %15 : vector<8x128xf32>
    %36 = vector.extract_strided_slice %35 {offsets = [0, 0], sizes = [8, 32], strides = [1, 1]} : vector<8x128xf32> to vector<8x32xf32>
    %37 = vector.extract_strided_slice %35 {offsets = [0, 32], sizes = [8, 32], strides = [1, 1]} : vector<8x128xf32> to vector<8x32xf32>
    %38 = vector.extract_strided_slice %35 {offsets = [0, 64], sizes = [8, 32], strides = [1, 1]} : vector<8x128xf32> to vector<8x32xf32>
    %39 = vector.extract_strided_slice %35 {offsets = [0, 96], sizes = [8, 32], strides = [1, 1]} : vector<8x128xf32> to vector<8x32xf32>
    %40 = arith.mulf %36, %37 : vector<8x32xf32>
    %41 = arith.mulf %27, %38 : vector<8x32xf32>
    %42 = arith.addf %40, %41 : vector<8x32xf32>
    %43 = math.tanh %42 : vector<8x32xf32>
    %44 = arith.mulf %43, %39 : vector<8x32xf32>
    %45 = vector.extract_strided_slice %6 {offsets = [16, 0], sizes = [8, 128], strides = [1, 1]} : vector<64x128xf32> to vector<8x128xf32>
    %cst_13 = arith.constant dense<0.000000e+00> : vector<8x128xf32>
    %46 = tpu.matmul %44, %0, %cst_13 {dimension_numbers = #tpu.dot_dimension_numbers<[1], [0], [0], [1], [0, 0, 1, 1], [], []>} : vector<8x32xf32>, vector<32x128xf32>, vector<8x128xf32> -> vector<8x128xf32>
    %47 = arith.addf %45, %46 : vector<8x128xf32>
    %48 = math.tanh %47 : vector<8x128xf32>
    %49 = arith.mulf %48, %12 : vector<8x128xf32>
    %50 = arith.addf %49, %15 : vector<8x128xf32>
    %51 = vector.extract_strided_slice %50 {offsets = [0, 0], sizes = [8, 32], strides = [1, 1]} : vector<8x128xf32> to vector<8x32xf32>
    %52 = vector.extract_strided_slice %50 {offsets = [0, 32], sizes = [8, 32], strides = [1, 1]} : vector<8x128xf32> to vector<8x32xf32>
    %53 = vector.extract_strided_slice %50 {offsets = [0, 64], sizes = [8, 32], strides = [1, 1]} : vector<8x128xf32> to vector<8x32xf32>
    %54 = vector.extract_strided_slice %50 {offsets = [0, 96], sizes = [8, 32], strides = [1, 1]} : vector<8x128xf32> to vector<8x32xf32>
    %55 = arith.mulf %51, %52 : vector<8x32xf32>
    %56 = arith.mulf %42, %53 : vector<8x32xf32>
    %57 = arith.addf %55, %56 : vector<8x32xf32>
    %58 = math.tanh %57 : vector<8x32xf32>
    %59 = arith.mulf %58, %54 : vector<8x32xf32>
    %60 = vector.extract_strided_slice %6 {offsets = [24, 0], sizes = [8, 128], strides = [1, 1]} : vector<64x128xf32> to vector<8x128xf32>
    %cst_14 = arith.constant dense<0.000000e+00> : vector<8x128xf32>
    %61 = tpu.matmul %59, %0, %cst_14 {dimension_numbers = #tpu.dot_dimension_numbers<[1], [0], [0], [1], [0, 0, 1, 1], [], []>} : vector<8x32xf32>, vector<32x128xf32>, vector<8x128xf32> -> vector<8x128xf32>
    %62 = arith.addf %60, %61 : vector<8x128xf32>
    %63 = math.tanh %62 : vector<8x128xf32>
    %64 = arith.mulf %63, %12 : vector<8x128xf32>
    %65 = arith.addf %64, %15 : vector<8x128xf32>
    %66 = vector.extract_strided_slice %65 {offsets = [0, 0], sizes = [8, 32], strides = [1, 1]} : vector<8x128xf32> to vector<8x32xf32>
    %67 = vector.extract_strided_slice %65 {offsets = [0, 32], sizes = [8, 32], strides = [1, 1]} : vector<8x128xf32> to vector<8x32xf32>
    %68 = vector.extract_strided_slice %65 {offsets = [0, 64], sizes = [8, 32], strides = [1, 1]} : vector<8x128xf32> to vector<8x32xf32>
    %69 = vector.extract_strided_slice %65 {offsets = [0, 96], sizes = [8, 32], strides = [1, 1]} : vector<8x128xf32> to vector<8x32xf32>
    %70 = arith.mulf %66, %67 : vector<8x32xf32>
    %71 = arith.mulf %57, %68 : vector<8x32xf32>
    %72 = arith.addf %70, %71 : vector<8x32xf32>
    %73 = math.tanh %72 : vector<8x32xf32>
    %74 = arith.mulf %73, %69 : vector<8x32xf32>
    %75 = vector.extract_strided_slice %6 {offsets = [32, 0], sizes = [8, 128], strides = [1, 1]} : vector<64x128xf32> to vector<8x128xf32>
    %cst_15 = arith.constant dense<0.000000e+00> : vector<8x128xf32>
    %76 = tpu.matmul %74, %0, %cst_15 {dimension_numbers = #tpu.dot_dimension_numbers<[1], [0], [0], [1], [0, 0, 1, 1], [], []>} : vector<8x32xf32>, vector<32x128xf32>, vector<8x128xf32> -> vector<8x128xf32>
    %77 = arith.addf %75, %76 : vector<8x128xf32>
    %78 = math.tanh %77 : vector<8x128xf32>
    %79 = arith.mulf %78, %12 : vector<8x128xf32>
    %80 = arith.addf %79, %15 : vector<8x128xf32>
    %81 = vector.extract_strided_slice %80 {offsets = [0, 0], sizes = [8, 32], strides = [1, 1]} : vector<8x128xf32> to vector<8x32xf32>
    %82 = vector.extract_strided_slice %80 {offsets = [0, 32], sizes = [8, 32], strides = [1, 1]} : vector<8x128xf32> to vector<8x32xf32>
    %83 = vector.extract_strided_slice %80 {offsets = [0, 64], sizes = [8, 32], strides = [1, 1]} : vector<8x128xf32> to vector<8x32xf32>
    %84 = vector.extract_strided_slice %80 {offsets = [0, 96], sizes = [8, 32], strides = [1, 1]} : vector<8x128xf32> to vector<8x32xf32>
    %85 = arith.mulf %81, %82 : vector<8x32xf32>
    %86 = arith.mulf %72, %83 : vector<8x32xf32>
    %87 = arith.addf %85, %86 : vector<8x32xf32>
    %88 = math.tanh %87 : vector<8x32xf32>
    %89 = arith.mulf %88, %84 : vector<8x32xf32>
    %90 = vector.extract_strided_slice %6 {offsets = [40, 0], sizes = [8, 128], strides = [1, 1]} : vector<64x128xf32> to vector<8x128xf32>
    %cst_16 = arith.constant dense<0.000000e+00> : vector<8x128xf32>
    %91 = tpu.matmul %89, %0, %cst_16 {dimension_numbers = #tpu.dot_dimension_numbers<[1], [0], [0], [1], [0, 0, 1, 1], [], []>} : vector<8x32xf32>, vector<32x128xf32>, vector<8x128xf32> -> vector<8x128xf32>
    %92 = arith.addf %90, %91 : vector<8x128xf32>
    %93 = math.tanh %92 : vector<8x128xf32>
    %94 = arith.mulf %93, %12 : vector<8x128xf32>
    %95 = arith.addf %94, %15 : vector<8x128xf32>
    %96 = vector.extract_strided_slice %95 {offsets = [0, 0], sizes = [8, 32], strides = [1, 1]} : vector<8x128xf32> to vector<8x32xf32>
    %97 = vector.extract_strided_slice %95 {offsets = [0, 32], sizes = [8, 32], strides = [1, 1]} : vector<8x128xf32> to vector<8x32xf32>
    %98 = vector.extract_strided_slice %95 {offsets = [0, 64], sizes = [8, 32], strides = [1, 1]} : vector<8x128xf32> to vector<8x32xf32>
    %99 = vector.extract_strided_slice %95 {offsets = [0, 96], sizes = [8, 32], strides = [1, 1]} : vector<8x128xf32> to vector<8x32xf32>
    %100 = arith.mulf %96, %97 : vector<8x32xf32>
    %101 = arith.mulf %87, %98 : vector<8x32xf32>
    %102 = arith.addf %100, %101 : vector<8x32xf32>
    %103 = math.tanh %102 : vector<8x32xf32>
    %104 = arith.mulf %103, %99 : vector<8x32xf32>
    %105 = vector.extract_strided_slice %6 {offsets = [48, 0], sizes = [8, 128], strides = [1, 1]} : vector<64x128xf32> to vector<8x128xf32>
    %cst_17 = arith.constant dense<0.000000e+00> : vector<8x128xf32>
    %106 = tpu.matmul %104, %0, %cst_17 {dimension_numbers = #tpu.dot_dimension_numbers<[1], [0], [0], [1], [0, 0, 1, 1], [], []>} : vector<8x32xf32>, vector<32x128xf32>, vector<8x128xf32> -> vector<8x128xf32>
    %107 = arith.addf %105, %106 : vector<8x128xf32>
    %108 = math.tanh %107 : vector<8x128xf32>
    %109 = arith.mulf %108, %12 : vector<8x128xf32>
    %110 = arith.addf %109, %15 : vector<8x128xf32>
    %111 = vector.extract_strided_slice %110 {offsets = [0, 0], sizes = [8, 32], strides = [1, 1]} : vector<8x128xf32> to vector<8x32xf32>
    %112 = vector.extract_strided_slice %110 {offsets = [0, 32], sizes = [8, 32], strides = [1, 1]} : vector<8x128xf32> to vector<8x32xf32>
    %113 = vector.extract_strided_slice %110 {offsets = [0, 64], sizes = [8, 32], strides = [1, 1]} : vector<8x128xf32> to vector<8x32xf32>
    %114 = vector.extract_strided_slice %110 {offsets = [0, 96], sizes = [8, 32], strides = [1, 1]} : vector<8x128xf32> to vector<8x32xf32>
    %115 = arith.mulf %111, %112 : vector<8x32xf32>
    %116 = arith.mulf %102, %113 : vector<8x32xf32>
    %117 = arith.addf %115, %116 : vector<8x32xf32>
    %118 = math.tanh %117 : vector<8x32xf32>
    %119 = arith.mulf %118, %114 : vector<8x32xf32>
    %120 = vector.extract_strided_slice %6 {offsets = [56, 0], sizes = [8, 128], strides = [1, 1]} : vector<64x128xf32> to vector<8x128xf32>
    %cst_18 = arith.constant dense<0.000000e+00> : vector<8x128xf32>
    %121 = tpu.matmul %119, %0, %cst_18 {dimension_numbers = #tpu.dot_dimension_numbers<[1], [0], [0], [1], [0, 0, 1, 1], [], []>} : vector<8x32xf32>, vector<32x128xf32>, vector<8x128xf32> -> vector<8x128xf32>
    %122 = arith.addf %120, %121 : vector<8x128xf32>
    %123 = math.tanh %122 : vector<8x128xf32>
    %124 = arith.mulf %123, %12 : vector<8x128xf32>
    %125 = arith.addf %124, %15 : vector<8x128xf32>
    %126 = vector.extract_strided_slice %125 {offsets = [0, 0], sizes = [8, 32], strides = [1, 1]} : vector<8x128xf32> to vector<8x32xf32>
    %127 = vector.extract_strided_slice %125 {offsets = [0, 32], sizes = [8, 32], strides = [1, 1]} : vector<8x128xf32> to vector<8x32xf32>
    %128 = vector.extract_strided_slice %125 {offsets = [0, 64], sizes = [8, 32], strides = [1, 1]} : vector<8x128xf32> to vector<8x32xf32>
    %129 = vector.extract_strided_slice %125 {offsets = [0, 96], sizes = [8, 32], strides = [1, 1]} : vector<8x128xf32> to vector<8x32xf32>
    %130 = arith.mulf %126, %127 : vector<8x32xf32>
    %131 = arith.mulf %117, %128 : vector<8x32xf32>
    %132 = arith.addf %130, %131 : vector<8x32xf32>
    %133 = math.tanh %132 : vector<8x32xf32>
    %134 = arith.mulf %133, %129 : vector<8x32xf32>
    %c0_19 = arith.constant 0 : index
    %c0_20 = arith.constant 0 : index
    %135 = vector.load %arg4[%c0_19, %c0_20] : memref<32x128xf32, #tpu.memory_space<vmem>>, vector<32x128xf32>
    %cst_21 = arith.constant dense<0.000000e+00> : vector<8x128xf32>
    %136 = tpu.matmul %134, %135, %cst_21 {dimension_numbers = #tpu.dot_dimension_numbers<[1], [0], [0], [1], [0, 0, 1, 1], [], []>} : vector<8x32xf32>, vector<32x128xf32>, vector<8x128xf32> -> vector<8x128xf32>
    %c0_22 = arith.constant 0 : index
    %c0_23 = arith.constant 0 : index
    %137 = vector.load %arg5[%c0_22, %c0_23] : memref<1x128xf32, #tpu.memory_space<vmem>>, vector<1x128xf32>
    %138 = vector.broadcast %137 : vector<1x128xf32> to vector<8x128xf32>
    %139 = arith.addf %136, %138 : vector<8x128xf32>
    %c0_24 = arith.constant 0 : index
    %c0_25 = arith.constant 0 : index
    %140 = vector.load %arg6[%c0_24, %c0_25] : memref<8x128xf32, #tpu.memory_space<vmem>>, vector<8x128xf32>
    tpu.vector_store %arg6[%c0_24, %c0_25], %139 {strides = array<i32>} : memref<8x128xf32, #tpu.memory_space<vmem>>, vector<8x128xf32>,
    return
  }
}

</mosaic_0001>

<bundles_post_ra>
// kernel: lstm_forward.1
= control target key start
LH: loop header
LB: loop body
LE: loop exit
PB: predicated region body
PF: predicated region fallthrough
CT: control target
= control target key end

     0   :  { %vm45_vm0 = vcmask 130048   ;;  %s1472_s0 = inlined_call_operand.vmem [shape: f32[64,16], index: 0, kind: input, shape index: {}]   ;;  %s1473_s1 = inlined_call_operand.vmem [shape: f32[16,128], index: 1, kind: input, shape index: {}]   ;;  %s1474_s2 = inlined_call_operand.vmem [shape: f32[32,128], index: 2, kind: input, shape index: {}]   ;;  %s1475_s3 = inlined_call_operand.vmem [shape: f32[1,128], index: 3, kind: input, shape index: {}]   ;;  %s1476_s4 = inlined_call_operand.vmem [shape: f32[32,128], index: 4, kind: input, shape index: {}]   ;;  %s1477_s5 = inlined_call_operand.vmem [shape: f32[1,128], index: 5, kind: input, shape index: {}]   ;;  %s1478_s6 = inlined_call_operand.hbm [shape: f32[8,128], index: 6, kind: output, shape index: {}]  }
   0x1   :  { %v36_v0 = vld [vmem:[%s1473_s1] sm:$0xff]  ;;  %v37_v1 = vld [vmem:[%s1473_s1 + $0x8] sm:$0xff] }
   0x2   :  { %v28_v2 = vld [vmem:[%s1472_s0] sm:$0xff]  ;;  %v1115_v3 = vpack.c.bf16 %v37_v1, %v36_v0 }
   0x3   :  { %1015 = vmatprep.mubr.msk.f32.mxu0 %vm45_vm0, %v28_v2 }
   0x4   :  { %11 = vsyncpa [#allocation3], 0  ;;  %1116 = vmatprep.subr.bf16.mxu0 %v1115_v3  ;;  %v29_v4 = vld [vmem:[%s1472_s0 + $0x8] sm:$0xff]  ;;  %v1291_v5 = vld [vmem:[%s1475_s3] ss:$0 sm:$0xff]  ;;  %v175_v8 = vlaneseq  ;;  %v1231_v11 = vmov 0.5  }
   0x5   :  { %1118 = vmatpush3.bf16.msra.mxu0 %v1115_v3  ;;  %v24_v13 = vld [vmem:[%s1474_s2] sm:$0xff]  ;;  %v25_v14 = vld [vmem:[%s1474_s2 + $0x8] sm:$0xff]  ;;  %v1232_v15 = vmov 0.0|0.0   ;;  %v26_v17 = vld [vmem:[%s1474_s2 + $0x10] sm:$0xff]  ;;  %vm1233_vm2 = vmmov 0   ;;  %v1234_v19 = vmov 0.0  }
   0x6   :  { %v176_v10 = vand.u32 127, %v175_v8  ;;  %1119 = vmatprep.subr.bf16.mxu1 %v1232_v15  ;;  %v1303_v16 = vpack.c.bf16 %v25_v14, %v24_v13  ;;  %v27_v18 = vld [vmem:[%s1474_s2 + $0x18] sm:$0xff]  ;;  %1035 = vmatprep.mubr.msk.f32.mxu1 %vm1233_vm2, %v1234_v19  ;;  %s1235_s2 = smov 32   ;;  %s1236_s13 = smov 96   ;;  %vm199_vm3 = vcmask 261120   ;;  %v30_v40 = vld [vmem:[%s1472_s0 + $0x10] sm:$0xff] }
   0x7   :  { %1131 = vmatprep.subr.bf16.mxu0 %v1232_v15  ;;  %v1320_v23 = vpack.c.bf16 %v27_v18, %v26_v17  ;;  %s1237_s14 = smov 64   ;;  %v31_v41 = vld [vmem:[%s1472_s0 + $0x18] sm:$0xff]  ;;  %v32_v56 = vld [vmem:[%s1472_s0 + $0x20] sm:$0xff]  ;;  %v33_v57 = vld [vmem:[%s1472_s0 + $0x28] sm:$0xff]  ;;  %s1238_s3 = smov [#allocation2]  }
   0x8   :  { %1016 = vmatmul.mubr.msk.f32.vlgmr.msra.gmra.mrb[0].mxu0 %vm45_vm0, %v29_v4  ;;  %vm177_vm1 = vcmp.lt.s32.totalorder %v176_v10, 32  ;;  %1121 = vmatpush3.bf16.msra.mxu1 %v1303_v16  ;;  %v34_v60 = vld [vmem:[%s1472_s0 + $0x30] sm:$0xff]  ;;  %v35_v62 = vld [vmem:[%s1472_s0 + $0x38] sm:$0xff]  ;;  %s935_s10 = sshll.u32 %s1238_s3, 4  ;;  %s936_s10 = int_to_ptr.vmem [resolvable:$true] %s935_s10 }
   0x9   :  { %v1294_v12 = vsel %vm177_vm1, 1.0, %v1231_v11  ;;  %v1313_v21 = vsel %vm177_vm1, 0.0, %v1231_v11  ;;  %1133 = vmatpush3.bf16.msra.mxu0 %v1303_v16  ;;  %1122 = vmatprep.subr.bf16.mxu1 %v1232_v15  ;;  %s1207_s11 = scalar_lea.vmem %s936_s10, 128  ;;  %p1212_p1 = scmp.lt.s32.totalorder %s936_s10, %s936_s10 }
   0xa   :  { %1134 = vmatprep.subr.bf16.mxu0 %v1232_v15  ;;  %1018 = vmatprep.mubr.msk.f32.mxu0 %vm45_vm0, %v30_v40  ;;  %p1208_p0 = scmp.ne.s32.totalorder %s936_s10, %s1207_s11  ;;  %p1213_p2 = scmp.lt.s32.totalorder %s1207_s11, %s1207_s11 }
   0xc   :  { %1124 = vmatpush3.bf16.msra.mxu1 %v1320_v23  ;;  %1019 = vmatmul.mubr.msk.f32.gmra.mrb[2].mxu0 %vm45_vm0, %v31_v41  ;;  %p1214_p3 = por %p1213_p2, %p1212_p1 }
   0xd   :  { %1136 = vmatpush3.bf16.msra.mxu0 %v1320_v23  ;;  %1125 = vmatprep.subr.bf16.mxu1 %v1232_v15 }
   0xe   :  { %1143 = vmatprep.subr.bf16.mxu0 %v1232_v15  ;;  %1021 = vmatprep.mubr.msk.f32.mxu0 %vm45_vm0, %v32_v56  ;;  %p1215_p4 = pnand %p1214_p3, %p1208_p0 }
  0x10   :  { %1022 = vmatmul.mubr.msk.f32.gmra.mrb[4].mxu0 %vm45_vm0, %v33_v57 }
  0x11   :  { %1024 = vmatprep.mubr.msk.f32.mxu0 %vm45_vm0, %v34_v60 }
  0x14   :  { %1025 = vmatmul.mubr.msk.f32.gmra.mrb[6].mxu0 %vm45_vm0, %v35_v62 }
  0x15   :  { %1057 = vmatprep.mubr.msk.f32.mxu0 %vm1233_vm2, %v1234_v19 }
  0xdb   :  { %v1017_v6 = vpop.f32.mrb[0].mxu0 }
  0xdc   :  { %v136_v7 = vpop.f32.mrb[1].mxu0  ;;  %v142_v33 = vadd.f32 %v1017_v6, %v1291_v5 }
  0xdd   :  { %v137_v9 = vadd.f32 %v1291_v5, %v136_v7 }
  0xdf   :  { %1175 = vtanh.f32 %v137_v9  ;;  %v1020_v50 = vpop.f32.mrb[2].mxu0 }
  0xe0   :  { %v146_v51 = vpop.f32.mrb[3].mxu0  ;;  %v152_v13 = vadd.f32 %v1020_v50, %v1291_v5 }
  0xe1   :  { %v147_v52 = vadd.f32 %v1291_v5, %v146_v51 }
  0xe3   :  { %v1023_v8 = vpop.f32.mrb[4].mxu0 }
  0xe4   :  { %v156_v9 = vpop.f32.mrb[5].mxu0 }
  0xe7   :  { %v1390_v10 = vpop.f32.mrb[6].mxu0 }
  0xe8   :  { %v1392_v11 = vpop.f32.mrb[7].mxu0 }
  0xe9   :  { %v1176_v20 = vpop.eup %1175 }
  0xea   :  { %v181_v22 = vmul.f32 %v1176_v20, %v1294_v12 }
  0xec   :  { %v182_v24 = vadd.f32 %v181_v22, %v1313_v21 }
  0xee   :  { %195 = vrot.lane.b32.xlu1 %v182_v24, %s1235_s2  ;;  %184 = vrot.lane.b32.xlu0 %v182_v24, %s1236_s13  ;;  %v188_v25 = vmul.f32 0.0, %v182_v24 }
  0xf2   :  { %190 = vrot.lane.b32.xlu0 %v188_v25, %s1237_s14 }
 0x160   :  { %v185_v26 = vpop.permute.xlu0 %184  ;;  %v196_v31 = vpop.permute.xlu1 %195 }
 0x161   :  { %v187_v27 = vmul.f32 %v185_v26, %v182_v24 }
 0x164   :  { %v191_v28 = vpop.permute.xlu0 %190 }
 0x165   :  { %v193_v29 = vadd.f32 %v191_v28, %v187_v27 }
 0x167   :  { %1177 = vtanh.f32 %v193_v29 }
 0x171   :  { %v1178_v30 = vpop.eup %1177 }
 0x172   :  { %v198_v32 = vmul.f32 %v1178_v30, %v196_v31 }
 0x174   :  { %1036 = vmatmul.mubr.msk.f32.vlgmr.msra.gmra.mrb[0].mxu1 %vm199_vm3, %v198_v32 }
 0x175   :  { %1127 = vmatpush3.bf16.msra.mxu1 %v1303_v16  ;;  %1046 = vmatprep.mubr.msk.f32.mxu1 %vm1233_vm2, %v1234_v19 }
 0x176   :  { %1128 = vmatprep.subr.bf16.mxu1 %v1232_v15 }
 0x179   :  { %1130 = vmatpush3.bf16.msra.mxu1 %v1320_v23 }
 0x17a   :  { %1137 = vmatprep.subr.bf16.mxu1 %v1232_v15 }
 0x247   :  { %v269_v34 = vpop.f32.mrb[0].mxu1 }
 0x248   :  { %v273_v35 = vadd.f32 %v269_v34, %v142_v33  ;;  %v1037_v36 = vpop.f32.mrb[1].mxu1  ;;  %v157_v33 = vadd.f32 %v1291_v5, %v156_v9 }
 0x24a   :  { %1179 = vtanh.f32 %v273_v35 }
 0x254   :  { %v1180_v37 = vpop.eup %1179 }
 0x255   :  { %v275_v38 = vmul.f32 %v1180_v37, %v1294_v12 }
 0x257   :  { %v276_v39 = vadd.f32 %v275_v38, %v1313_v21 }
 0x259   :  { %282 = vrot.lane.b32.xlu0 %v276_v39, %s1237_s14  ;;  %278 = vrot.lane.b32.xlu1 %v276_v39, %s1236_s13 }
 0x25d   :  { %288 = vrot.lane.b32.xlu1 %v276_v39, %s1235_s2 }
 0x2cb   :  { %v283_v42 = vpop.permute.xlu0 %282  ;;  %v279_v43 = vpop.permute.xlu1 %278 }
 0x2cc   :  { %v285_v44 = vmul.f32 %v283_v42, %v193_v29  ;;  %v281_v45 = vmul.f32 %v279_v43, %v276_v39 }
 0x2ce   :  { %v286_v46 = vadd.f32 %v285_v44, %v281_v45 }
 0x2cf   :  { %v289_v48 = vpop.permute.xlu1 %288 }
 0x2d0   :  { %1181 = vtanh.f32 %v286_v46 }
 0x2da   :  { %v1182_v47 = vpop.eup %1181 }
 0x2db   :  { %v291_v49 = vmul.f32 %v1182_v47, %v289_v48  ;;  %v162_v48 = vadd.f32 %v1023_v8, %v1291_v5 }
 0x2dd   :  { %1047 = vmatmul.mubr.msk.f32.vlgmr.msra.gmra.mrb[2].mxu1 %vm199_vm3, %v291_v49 }
 0x2de   :  { %1139 = vmatpush3.bf16.msra.mxu1 %v1303_v16  ;;  %1068 = vmatprep.mubr.msk.f32.mxu1 %vm1233_vm2, %v1234_v19 }
 0x2df   :  { %1140 = vmatprep.subr.bf16.mxu1 %v1232_v15 }
 0x2e2   :  { %1142 = vmatpush3.bf16.msra.mxu1 %v1320_v23 }
 0x2e3   :  { %1149 = vmatprep.subr.bf16.mxu1 %v1232_v15 }
 0x3b0   :  { %v361_v53 = vpop.f32.mrb[2].mxu1 }
 0x3b1   :  { %v365_v54 = vadd.f32 %v361_v53, %v147_v52  ;;  %v1048_v55 = vpop.f32.mrb[3].mxu1 }
 0x3b3   :  { %1183 = vtanh.f32 %v365_v54 }
 0x3bd   :  { %v1184_v58 = vpop.eup %1183 }
 0x3be   :  { %v367_v59 = vmul.f32 %v1184_v58, %v1294_v12 }
 0x3c0   :  { %v368_v61 = vadd.f32 %v367_v59, %v1313_v21 }
 0x3c2   :  { %374 = vrot.lane.b32.xlu1 %v368_v61, %s1237_s14  ;;  %370 = vrot.lane.b32.xlu0 %v368_v61, %s1236_s13 }
 0x3c6   :  { %380 = vrot.lane.b32.xlu0 %v368_v61, %s1235_s2 }
 0x434   :  { %v375_v63 = vpop.permute.xlu1 %374  ;;  %v371_v0 = vpop.permute.xlu0 %370 }
 0x435   :  { %v377_v1 = vmul.f32 %v375_v63, %v286_v46  ;;  %v373_v2 = vmul.f32 %v371_v0, %v368_v61  ;;  %v167_v61 = vadd.f32 %v1291_v5, %v1392_v11 }
 0x437   :  { %v378_v3 = vadd.f32 %v377_v1, %v373_v2 }
 0x438   :  { %v381_v6 = vpop.permute.xlu0 %380 }
 0x439   :  { %1185 = vtanh.f32 %v378_v3 }
 0x443   :  { %v1186_v4 = vpop.eup %1185 }
 0x444   :  { %v383_v7 = vmul.f32 %v1186_v4, %v381_v6 }
 0x446   :  { %1058 = vmatmul.mubr.msk.f32.vlgmr.msra.gmra.mrb[8].mxu0 %vm199_vm3, %v383_v7 }
 0x447   :  { %1145 = vmatpush3.bf16.msra.mxu0 %v1303_v16  ;;  %1079 = vmatprep.mubr.msk.f32.mxu0 %vm1233_vm2, %v1234_v19 }
 0x448   :  { %1146 = vmatprep.subr.bf16.mxu0 %v1232_v15 }
 0x44b   :  { %1148 = vmatpush3.bf16.msra.mxu0 %v1320_v23 }
 0x44c   :  { %1155 = vmatprep.subr.bf16.mxu0 %v1232_v15 }
 0x519   :  { %v453_v14 = vpop.f32.mrb[8].mxu0 }
 0x51a   :  { %v457_v17 = vadd.f32 %v453_v14, %v152_v13  ;;  %v1059_v18 = vpop.f32.mrb[9].mxu0  ;;  %v172_v14 = vadd.f32 %v1390_v10, %v1291_v5  ;;  %v846_v5 = vld [vmem:[%s1476_s4 + $0x10] sm:$0xff]  ;;  %v847_v10 = vld [vmem:[%s1476_s4 + $0x18] sm:$0xff] }
 0x51c   :  { %1187 = vtanh.f32 %v457_v17 }
 0x526   :  { %v1188_v20 = vpop.eup %1187 }
 0x527   :  { %v459_v22 = vmul.f32 %v1188_v20, %v1294_v12 }
 0x529   :  { %v460_v24 = vadd.f32 %v459_v22, %v1313_v21  ;;  %v844_v22 = vld [vmem:[%s1476_s4] sm:$0xff] }
 0x52b   :  { %466 = vrot.lane.b32.xlu0 %v460_v24, %s1237_s14  ;;  %462 = vrot.lane.b32.xlu1 %v460_v24, %s1236_s13 }
 0x52f   :  { %472 = vrot.lane.b32.xlu1 %v460_v24, %s1235_s2 }
 0x59d   :  { %v467_v25 = vpop.permute.xlu0 %466  ;;  %v463_v26 = vpop.permute.xlu1 %462 }
 0x59e   :  { %v469_v27 = vmul.f32 %v467_v25, %v378_v3  ;;  %v465_v28 = vmul.f32 %v463_v26, %v460_v24  ;;  %v845_v24 = vld [vmem:[%s1476_s4 + $0x8] sm:$0xff] }
 0x59f   :  { %v1162_v26 = vpack.c.bf16 %v845_v24, %v844_v22 }
 0x5a0   :  { %v470_v29 = vadd.f32 %v469_v27, %v465_v28 }
 0x5a1   :  { %v473_v31 = vpop.permute.xlu1 %472 }
 0x5a2   :  { %1189 = vtanh.f32 %v470_v29 }
 0x5ac   :  { %v1190_v30 = vpop.eup %1189 }
 0x5ad   :  { %v475_v32 = vmul.f32 %v1190_v30, %v473_v31 }
 0x5af   :  { %1069 = vmatmul.mubr.msk.f32.vlgmr.msra.gmra.mrb[4].mxu1 %vm199_vm3, %v475_v32 }
 0x5b0   :  { %1151 = vmatpush3.bf16.msra.mxu1 %v1303_v16  ;;  %1090 = vmatprep.mubr.msk.f32.mxu1 %vm1233_vm2, %v1234_v19 }
 0x5b1   :  { %1152 = vmatprep.subr.bf16.mxu1 %v1232_v15 }
 0x5b4   :  { %1154 = vmatpush3.bf16.msra.mxu1 %v1320_v23 }
 0x5b5   :  { %1161 = vmatprep.subr.bf16.mxu1 %v1232_v15 }
 0x682   :  { %v545_v34 = vpop.f32.mrb[4].mxu1 }
 0x683   :  { %v549_v35 = vadd.f32 %v545_v34, %v157_v33  ;;  %v1070_v36 = vpop.f32.mrb[5].mxu1 }
 0x685   :  { %1191 = vtanh.f32 %v549_v35  ;;  %v959_v35 = vld [vmem:[%s1477_s5] ss:$0 sm:$0xff] }
 0x68f   :  { %v1192_v37 = vpop.eup %1191 }
 0x690   :  { %v551_v38 = vmul.f32 %v1192_v37, %v1294_v12 }
 0x692   :  { %v552_v39 = vadd.f32 %v551_v38, %v1313_v21 }
 0x694   :  { %558 = vrot.lane.b32.xlu1 %v552_v39, %s1237_s14  ;;  %554 = vrot.lane.b32.xlu0 %v552_v39, %s1236_s13 }
 0x698   :  { %564 = vrot.lane.b32.xlu0 %v552_v39, %s1235_s2 }
 0x706   :  { %v559_v40 = vpop.permute.xlu1 %558  ;;  %v555_v41 = vpop.permute.xlu0 %554 }
 0x707   :  { %v561_v42 = vmul.f32 %v559_v40, %v470_v29  ;;  %v557_v43 = vmul.f32 %v555_v41, %v552_v39  ;;  %v1165_v29 = vpack.c.bf16 %v847_v10, %v846_v5 }
 0x709   :  { %v562_v44 = vadd.f32 %v561_v42, %v557_v43 }
 0x70a   :  { %v565_v46 = vpop.permute.xlu0 %564 }
 0x70b   :  { %1193 = vtanh.f32 %v562_v44 }
 0x715   :  { %v1194_v45 = vpop.eup %1193 }
 0x716   :  { %v567_v47 = vmul.f32 %v1194_v45, %v565_v46 }
 0x718   :  { %1080 = vmatmul.mubr.msk.f32.vlgmr.msra.gmra.mrb[10].mxu0 %vm199_vm3, %v567_v47 }
 0x719   :  { %1157 = vmatpush3.bf16.msra.mxu0 %v1303_v16  ;;  %1101 = vmatprep.mubr.msk.f32.mxu0 %vm1233_vm2, %v1234_v19 }
 0x71a   :  { %1158 = vmatprep.subr.bf16.mxu0 %v1232_v15 }
 0x71d   :  { %1160 = vmatpush3.bf16.msra.mxu0 %v1320_v23 }
 0x7eb   :  { %v637_v49 = vpop.f32.mrb[10].mxu0 }
 0x7ec   :  { %v641_v50 = vadd.f32 %v637_v49, %v162_v48  ;;  %v1081_v51 = vpop.f32.mrb[11].mxu0 }
 0x7ee   :  { %1195 = vtanh.f32 %v641_v50 }
 0x7f8   :  { %v1196_v52 = vpop.eup %1195 }
 0x7f9   :  { %v643_v53 = vmul.f32 %v1196_v52, %v1294_v12 }
 0x7fb   :  { %v644_v54 = vadd.f32 %v643_v53, %v1313_v21 }
 0x7fd   :  { %650 = vrot.lane.b32.xlu0 %v644_v54, %s1237_s14  ;;  %646 = vrot.lane.b32.xlu1 %v644_v54, %s1236_s13 }
 0x801   :  { %656 = vrot.lane.b32.xlu1 %v644_v54, %s1235_s2 }
 0x86f   :  { %v651_v16 = vpop.permute.xlu0 %650  ;;  %v647_v55 = vpop.permute.xlu1 %646 }
 0x870   :  { %v653_v23 = vmul.f32 %v651_v16, %v562_v44  ;;  %v649_v56 = vmul.f32 %v647_v55, %v644_v54 }
 0x872   :  { %v654_v57 = vadd.f32 %v653_v23, %v649_v56 }
 0x873   :  { %v657_v59 = vpop.permute.xlu1 %656 }
 0x874   :  { %1197 = vtanh.f32 %v654_v57 }
 0x87e   :  { %v1198_v58 = vpop.eup %1197 }
 0x87f   :  { %v659_v60 = vmul.f32 %v1198_v58, %v657_v59 }
 0x881   :  { %1091 = vmatmul.mubr.msk.f32.vlgmr.msra.gmra.mrb[6].mxu1 %vm199_vm3, %v659_v60 }
 0x882   :  { %1112 = vmatprep.mubr.msk.f32.mxu1 %vm1233_vm2, %v1234_v19  ;;  %1163 = vmatpush3.bf16.msra.mxu1 %v1162_v26 }
 0x883   :  { %1164 = vmatprep.subr.bf16.mxu1 %v1232_v15 }
 0x886   :  { %1166 = vmatpush3.bf16.msra.mxu1 %v1165_v29 }
 0x954   :  { %v729_v62 = vpop.f32.mrb[6].mxu1 }
 0x955   :  { %v733_v63 = vadd.f32 %v729_v62, %v167_v61  ;;  %v1092_v0 = vpop.f32.mrb[7].mxu1 }
 0x957   :  { %1199 = vtanh.f32 %v733_v63 }
 0x961   :  { %v1200_v1 = vpop.eup %1199 }
 0x962   :  { %v735_v2 = vmul.f32 %v1200_v1, %v1294_v12 }
 0x964   :  { %v736_v3 = vadd.f32 %v735_v2, %v1313_v21 }
 0x966   :  { %742 = vrot.lane.b32.xlu1 %v736_v3, %s1237_s14  ;;  %738 = vrot.lane.b32.xlu0 %v736_v3, %s1236_s13 }
 0x96a   :  { %748 = vrot.lane.b32.xlu0 %v736_v3, %s1235_s2 }
 0x9d8   :  { %v743_v4 = vpop.permute.xlu1 %742  ;;  %v739_v19 = vpop.permute.xlu0 %738 }
 0x9d9   :  { %v745_v6 = vmul.f32 %v743_v4, %v654_v57  ;;  %v741_v7 = vmul.f32 %v739_v19, %v736_v3 }
 0x9db   :  { %v746_v8 = vadd.f32 %v745_v6, %v741_v7 }
 0x9dc   :  { %v749_v11 = vpop.permute.xlu0 %748 }
 0x9dd   :  { %1201 = vtanh.f32 %v746_v8 }
 0x9e7   :  { %v1202_v9 = vpop.eup %1201 }
 0x9e8   :  { %v751_v13 = vmul.f32 %v1202_v9, %v749_v11 }
 0x9ea   :  { %1102 = vmatmul.mubr.msk.f32.vlgmr.msra.gmra.mrb[12].mxu0 %vm199_vm3, %v751_v13 }
 0xabd   :  { %v821_v17 = vpop.f32.mrb[12].mxu0 }
 0xabe   :  { %v825_v18 = vadd.f32 %v821_v17, %v172_v14  ;;  %v1103_v20 = vpop.f32.mrb[13].mxu0 }
 0xac0   :  { %1203 = vtanh.f32 %v825_v18 }
 0xaca   :  { %v1204_v25 = vpop.eup %1203 }
 0xacb   :  { %v827_v27 = vmul.f32 %v1204_v25, %v1294_v12 }
 0xacd   :  { %v828_v28 = vadd.f32 %v827_v27, %v1313_v21 }
 0xacf   :  { %834 = vrot.lane.b32.xlu0 %v828_v28, %s1237_s14  ;;  %830 = vrot.lane.b32.xlu1 %v828_v28, %s1236_s13 }
 0xad3   :  { %840 = vrot.lane.b32.xlu1 %v828_v28, %s1235_s2 }
 0xb41   :  { %v835_v12 = vpop.permute.xlu0 %834  ;;  %v831_v21 = vpop.permute.xlu1 %830 }
 0xb42   :  { %v837_v30 = vmul.f32 %v835_v12, %v746_v8  ;;  %v833_v15 = vmul.f32 %v831_v21, %v828_v28 }
 0xb44   :  { %v838_v31 = vadd.f32 %v837_v30, %v833_v15 }
 0xb45   :  { %v841_v33 = vpop.permute.xlu1 %840 }
 0xb46   :  { %1205 = vtanh.f32 %v838_v31 }
 0xb50   :  { %v1206_v32 = vpop.eup %1205 }
 0xb51   :  { %v843_v34 = vmul.f32 %v1206_v32, %v841_v33 }
 0xb53   :  { %1113 = vmatmul.mubr.msk.f32.vlgmr.msra.gmra.mrb[8].mxu1 %vm199_vm3, %v843_v34 }
 0xc26   :  { %v924_v36 = vpop.f32.mrb[8].mxu1 }
 0xc27   :  { %v925_v37 = vadd.f32 %v959_v35, %v924_v36  ;;  %v1114_v38 = vpop.f32.mrb[9].mxu1 }
 0xc29   :  { %928 = vst [vmem:[#allocation2] sm:$0xff] %v925_v37 }
 0xc2a   :  { %1218 = shalt.err (!%p1215_p4)
}
 0xc2b   :  { %s1219_s13 = scalar_lea.hbm %s1478_s6, 128 }
 0xc2c   :  { %p1220_p5 = scmp.ne.s32.totalorder %s1478_s6, %s1219_s13  ;;  %p1223_p6 = scmp.lt.u32.totalorder %s1219_s13, %s1478_s6 }
 0xc2e   :  { %p1225_p7 = pnand %p1223_p6, %p1220_p5 }
 0xc30   :  { %1228 = shalt.err (!%p1225_p7)
}
 0xc31   :  { %938 = dma.vmem_to_hbm [thread:$0]  %s936_s10, 128, %s1478_s6, [#allocation3]  }
 0xc32   :  { %1229 = dma.done.wait [#allocation3], 128  }
 0xc33   :  { %1230 = vsyncadd [#allocation3], 4294967168 }
 0xc34   :  { %942 = vsyncpa [#allocation3], 1 }

</bundles_post_ra>
